<compile_context>
chip_gen: v6e
topology: v6e:2x2x1
jax: 0.10.0
libtpu: 0.0.40
codegen_flags: <defaults>
</compile_context>

<pallas_src>
import functools

import jax
import jax.numpy as jnp
from jax.experimental import pallas as pl
from jax.experimental.pallas import tpu as pltpu

LANES = 128


def _round_up(x: int, m: int) -> int:
    return ((x + m - 1) // m) * m


def _dnn_kernel(d1_ref, d2_ref, cf_ref,
                w1a_ref, w1b_ref, w1c_ref, b1_ref,
                w2_ref, b2_ref, w3_ref, b3_ref, o_ref):
    # Layer 1: x @ W1 == d1 @ W1a + d2 @ W1b + cell @ W1c  (bf16 -> f32 acc)
    h1 = jnp.dot(d1_ref[...], w1a_ref[...], preferred_element_type=jnp.float32)
    h1 = h1 + jnp.dot(d2_ref[...], w1b_ref[...], preferred_element_type=jnp.float32)
    h1 = h1 + jnp.dot(cf_ref[...], w1c_ref[...], preferred_element_type=jnp.float32)
    h1 = jnp.maximum(h1 + b1_ref[...], 0.0)

    # Layer 2
    h2 = jnp.dot(h1.astype(jnp.bfloat16), w2_ref[...],
                 preferred_element_type=jnp.float32)
    h2 = jnp.maximum(h2 + b2_ref[...], 0.0)

    # Layer 3: output feature dim padded to 128 lanes -> dense, unmasked store.
    out = jnp.dot(h2.astype(jnp.bfloat16), w3_ref[...],
                  preferred_element_type=jnp.float32)
    o_ref[...] = (out + b3_ref[...]).astype(o_ref.dtype)


@functools.partial(jax.jit, static_argnames=("tile_b",))
def dnn_forward(drug1_feat, drug2_feat, cell_feat, params, *, tile_b=None):
    """Fused MLP: [concat] -> Linear -> ReLU -> Linear -> ReLU -> Linear."""
    w1, b1, w2, b2, w3, b3 = params

    B = drug1_feat.shape[0]
    d1f = drug1_feat.shape[1]
    d2f = drug2_feat.shape[1]
    dcf = cell_feat.shape[1]
    H = w1.shape[1]
    H2 = w2.shape[1]
    Hp = _round_up(H, LANES)
    H2p = _round_up(H2, LANES)

    # Batch tile: 16..256 rows per grid step (multiple of 16 for bf16 packing).
    if tile_b is None:
        tile_b = min(256, _round_up(B, 16))
    tile_b = max(16, _round_up(tile_b, 16))
    B_pad = _round_up(B, tile_b)

    def pad2(a, rows, cols):
        return jnp.pad(a, ((0, rows - a.shape[0]), (0, cols - a.shape[1])))

    # Inputs: zero-pad batch rows, cast to bf16 (feature axes stay full-width).
    d1 = pad2(drug1_feat, B_pad, d1f).astype(jnp.bfloat16)
    d2 = pad2(drug2_feat, B_pad, d2f).astype(jnp.bfloat16)
    cf = pad2(cell_feat, B_pad, dcf).astype(jnp.bfloat16)

    # Weights: split W1 along the concat axis, zero-pad hidden dims to 128, bf16.
    w1a = pad2(w1[:d1f], d1f, Hp).astype(jnp.bfloat16)
    w1b = pad2(w1[d1f:d1f + d2f], d2f, Hp).astype(jnp.bfloat16)
    w1c = pad2(w1[d1f + d2f:], dcf, Hp).astype(jnp.bfloat16)
    b1p = pad2(b1.reshape(1, -1).astype(jnp.float32), 1, Hp)
    w2p = pad2(w2, Hp, H2p).astype(jnp.bfloat16)
    b2p = pad2(b2.reshape(1, -1).astype(jnp.float32), 1, H2p)
    w3p = pad2(w3, H2p, LANES).astype(jnp.bfloat16)
    b3p = pad2(b3.reshape(1, -1).astype(jnp.float32), 1, LANES)

    grid = (B_pad // tile_b,)

    def row_map(i):
        return (i, 0)

    def const_map(i):
        return (0, 0)

    def resident(shape):
        # Grid-invariant block: DMA'd once, stays in VMEM for the whole grid.
        return pl.BlockSpec(shape, const_map)

    out = pl.pallas_call(
        _dnn_kernel,
        out_shape=jax.ShapeDtypeStruct((B_pad, LANES), jnp.float32),
        grid_spec=pltpu.PrefetchScalarGridSpec(
            num_scalar_prefetch=0,
            grid=grid,
            in_specs=[
                pl.BlockSpec((tile_b, d1f), row_map),   # drug1 tile
                pl.BlockSpec((tile_b, d2f), row_map),   # drug2 tile
                pl.BlockSpec((tile_b, dcf), row_map),   # cell tile
                resident((d1f, Hp)),                    # W1a
                resident((d2f, Hp)),                    # W1b
                resident((dcf, Hp)),                    # W1c
                resident((1, Hp)),                      # b1
                resident((Hp, H2p)),                    # W2
                resident((1, H2p)),                     # b2
                resident((H2p, LANES)),                 # W3 (padded to 128 cols)
                resident((1, LANES)),                   # b3
            ],
            out_specs=pl.BlockSpec((tile_b, LANES), row_map),
        ),
        compiler_params=pltpu.CompilerParams(
            dimension_semantics=("parallel",),
            vmem_limit_bytes=64 * 1024 * 1024,
        ),
    )(d1, d2, cf, w1a, w1b, w1c, b1p, w2p, b2p, w3p, b3p)

    # Lane-dense (B_pad, 128) slab -> real (B, 1) result.
    return out[:B, :1]


def init_params(key, input_size, hidden_size):
    """Deterministic init mimicking nn.Linear (uniform +-1/sqrt(fan_in)). f32 masters."""
    h2 = hidden_size // 2
    k1, k2, k3, k4, k5, k6 = jax.random.split(key, 6)

    def lin(kw, kb, fan_in, fan_out):
        bound = 1.0 / jnp.sqrt(fan_in)
        w = jax.random.uniform(kw, (fan_in, fan_out), jnp.float32, -bound, bound)
        b = jax.random.uniform(kb, (1, fan_out), jnp.float32, -bound, bound)
        return w, b

    w1, b1 = lin(k1, k2, input_size, hidden_size)
    w2, b2 = lin(k3, k4, hidden_size, h2)
    w3, b3 = lin(k5, k6, h2, 1)
    return (w1, b1, w2, b2, w3, b3)


def _reference(drug1, drug2, cell, params):
    # Pure f32 reference matching the PyTorch module in eval mode.
    w1, b1, w2, b2, w3, b3 = params
    x = jnp.concatenate([drug1, drug2, cell], axis=1)
    h1 = jnp.maximum(x @ w1 + b1, 0.0)
    h2 = jnp.maximum(h1 @ w2 + b2, 0.0)
    return h2 @ w3 + b3


if __name__ == "__main__":
    key = jax.random.PRNGKey(0)
    kd1, kd2, kc, kp = jax.random.split(key, 4)

    # Small shapes: drug features 16-d each, cell features 32-d -> input_size=64.
    batch = 8
    d_drug = 16
    d_cell = 32
    input_size = 2 * d_drug + d_cell  # 64
    hidden_size = 32

    drug1_feat = jax.random.normal(kd1, (batch, d_drug), jnp.float32)
    drug2_feat = jax.random.normal(kd2, (batch, d_drug), jnp.float32)
    cell_feat = jax.random.normal(kc, (batch, d_cell), jnp.float32)

    params = init_params(kp, input_size, hidden_size)

    out = dnn_forward(drug1_feat, drug2_feat, cell_feat, params)
    out = jax.block_until_ready(out)

    ref = _reference(drug1_feat, drug2_feat, cell_feat, params)
    assert out.shape == (batch, 1), out.shape
    # bf16 operands (f32 accumulation) -> compare against f32 ref with loose tol.
    max_err = float(jnp.max(jnp.abs(out - ref)))
    assert jnp.allclose(out, ref, atol=5e-2, rtol=5e-2), f"max abs err {max_err}"

    print("KERNEL_OK")
</pallas_src>

<mosaic_0001>
module attributes {stable_mosaic.version = 11 : i64} {
  func.func @_dnn_kernel(%arg0: i32, %arg1: memref<16x16xbf16, #tpu.memory_space<vmem>>, %arg2: memref<16x16xbf16, #tpu.memory_space<vmem>>, %arg3: memref<16x32xbf16, #tpu.memory_space<vmem>>, %arg4: memref<16x128xbf16, #tpu.memory_space<vmem>>, %arg5: memref<16x128xbf16, #tpu.memory_space<vmem>>, %arg6: memref<32x128xbf16, #tpu.memory_space<vmem>>, %arg7: memref<1x128xf32, #tpu.memory_space<vmem>>, %arg8: memref<128x128xbf16, #tpu.memory_space<vmem>>, %arg9: memref<1x128xf32, #tpu.memory_space<vmem>>, %arg10: memref<128x128xbf16, #tpu.memory_space<vmem>>, %arg11: memref<1x128xf32, #tpu.memory_space<vmem>>, %arg12: memref<16x128xf32, #tpu.memory_space<vmem>>) attributes {dimension_semantics = [#tpu.dimension_semantics<parallel>], iteration_bounds = array<i64: 1>, scalar_prefetch = 0 : i64, scratch_operands = 0 : i64, tpu.core_type = #tpu.core_type<tc>, window_params = [{transform_indices = @transform_0, window_bounds = array<i64: 16, 16>}, {transform_indices = @transform_1, window_bounds = array<i64: 16, 16>}, {transform_indices = @transform_2, window_bounds = array<i64: 16, 32>}, {pipeline_mode = #tpu.pipeline_mode<synchronous>, transform_indices = @transform_3, window_bounds = array<i64: 16, 128>}, {pipeline_mode = #tpu.pipeline_mode<synchronous>, transform_indices = @transform_4, window_bounds = array<i64: 16, 128>}, {pipeline_mode = #tpu.pipeline_mode<synchronous>, transform_indices = @transform_5, window_bounds = array<i64: 32, 128>}, {pipeline_mode = #tpu.pipeline_mode<synchronous>, transform_indices = @transform_6, window_bounds = array<i64: 1, 128>}, {pipeline_mode = #tpu.pipeline_mode<synchronous>, transform_indices = @transform_7, window_bounds = array<i64: 128, 128>}, {pipeline_mode = #tpu.pipeline_mode<synchronous>, transform_indices = @transform_8, window_bounds = array<i64: 1, 128>}, {pipeline_mode = #tpu.pipeline_mode<synchronous>, transform_indices = @transform_9, window_bounds = array<i64: 128, 128>}, {pipeline_mode = #tpu.pipeline_mode<synchronous>, transform_indices = @transform_10, window_bounds = array<i64: 1, 128>}, {transform_indices = @transform_11, window_bounds = array<i64: 16, 128>}]} {
    %c0 = arith.constant 0 : index
    %c0_0 = arith.constant 0 : index
    %0 = vector.load %arg1[%c0, %c0_0] : memref<16x16xbf16, #tpu.memory_space<vmem>>, vector<16x16xbf16>
    %c0_1 = arith.constant 0 : index
    %c0_2 = arith.constant 0 : index
    %1 = vector.load %arg4[%c0_1, %c0_2] : memref<16x128xbf16, #tpu.memory_space<vmem>>, vector<16x128xbf16>
    %cst = arith.constant dense<0.000000e+00> : vector<16x128xf32>
    %2 = tpu.matmul %0, %1, %cst {dimension_numbers = #tpu.dot_dimension_numbers<[1], [0], [0], [1], [0, 0, 1, 1], [], []>} : vector<16x16xbf16>, vector<16x128xbf16>, vector<16x128xf32> -> vector<16x128xf32>
    %c0_3 = arith.constant 0 : index
    %c0_4 = arith.constant 0 : index
    %3 = vector.load %arg2[%c0_3, %c0_4] : memref<16x16xbf16, #tpu.memory_space<vmem>>, vector<16x16xbf16>
    %c0_5 = arith.constant 0 : index
    %c0_6 = arith.constant 0 : index
    %4 = vector.load %arg5[%c0_5, %c0_6] : memref<16x128xbf16, #tpu.memory_space<vmem>>, vector<16x128xbf16>
    %cst_7 = arith.constant dense<0.000000e+00> : vector<16x128xf32>
    %5 = tpu.matmul %3, %4, %cst_7 {dimension_numbers = #tpu.dot_dimension_numbers<[1], [0], [0], [1], [0, 0, 1, 1], [], []>} : vector<16x16xbf16>, vector<16x128xbf16>, vector<16x128xf32> -> vector<16x128xf32>
    %6 = arith.addf %2, %5 : vector<16x128xf32>
    %c0_8 = arith.constant 0 : index
    %c0_9 = arith.constant 0 : index
    %7 = vector.load %arg3[%c0_8, %c0_9] : memref<16x32xbf16, #tpu.memory_space<vmem>>, vector<16x32xbf16>
    %c0_10 = arith.constant 0 : index
    %c0_11 = arith.constant 0 : index
    %8 = vector.load %arg6[%c0_10, %c0_11] : memref<32x128xbf16, #tpu.memory_space<vmem>>, vector<32x128xbf16>
    %cst_12 = arith.constant dense<0.000000e+00> : vector<16x128xf32>
    %9 = tpu.matmul %7, %8, %cst_12 {dimension_numbers = #tpu.dot_dimension_numbers<[1], [0], [0], [1], [0, 0, 1, 1], [], []>} : vector<16x32xbf16>, vector<32x128xbf16>, vector<16x128xf32> -> vector<16x128xf32>
    %10 = arith.addf %6, %9 : vector<16x128xf32>
    %c0_13 = arith.constant 0 : index
    %c0_14 = arith.constant 0 : index
    %11 = vector.load %arg7[%c0_13, %c0_14] : memref<1x128xf32, #tpu.memory_space<vmem>>, vector<1x128xf32>
    %12 = vector.broadcast %11 : vector<1x128xf32> to vector<16x128xf32>
    %13 = arith.addf %10, %12 : vector<16x128xf32>
    %cst_15 = arith.constant 0.000000e+00 : f32
    %14 = vector.broadcast %cst_15 : f32 to vector<16x128xf32>
    %15 = arith.maximumf %13, %14 : vector<16x128xf32>
    %16 = arith.truncf %15 : vector<16x128xf32> to vector<16x128xbf16>
    %c0_16 = arith.constant 0 : index
    %c0_17 = arith.constant 0 : index
    %17 = vector.load %arg8[%c0_16, %c0_17] : memref<128x128xbf16, #tpu.memory_space<vmem>>, vector<128x128xbf16>
    %cst_18 = arith.constant dense<0.000000e+00> : vector<16x128xf32>
    %18 = tpu.matmul %16, %17, %cst_18 {dimension_numbers = #tpu.dot_dimension_numbers<[1], [0], [0], [1], [0, 0, 1, 1], [], []>} : vector<16x128xbf16>, vector<128x128xbf16>, vector<16x128xf32> -> vector<16x128xf32>
    %c0_19 = arith.constant 0 : index
    %c0_20 = arith.constant 0 : index
    %19 = vector.load %arg9[%c0_19, %c0_20] : memref<1x128xf32, #tpu.memory_space<vmem>>, vector<1x128xf32>
    %20 = vector.broadcast %19 : vector<1x128xf32> to vector<16x128xf32>
    %21 = arith.addf %18, %20 : vector<16x128xf32>
    %cst_21 = arith.constant 0.000000e+00 : f32
    %22 = vector.broadcast %cst_21 : f32 to vector<16x128xf32>
    %23 = arith.maximumf %21, %22 : vector<16x128xf32>
    %24 = arith.truncf %23 : vector<16x128xf32> to vector<16x128xbf16>
    %c0_22 = arith.constant 0 : index
    %c0_23 = arith.constant 0 : index
    %25 = vector.load %arg10[%c0_22, %c0_23] : memref<128x128xbf16, #tpu.memory_space<vmem>>, vector<128x128xbf16>
    %cst_24 = arith.constant dense<0.000000e+00> : vector<16x128xf32>
    %26 = tpu.matmul %24, %25, %cst_24 {dimension_numbers = #tpu.dot_dimension_numbers<[1], [0], [0], [1], [0, 0, 1, 1], [], []>} : vector<16x128xbf16>, vector<128x128xbf16>, vector<16x128xf32> -> vector<16x128xf32>
    %c0_25 = arith.constant 0 : index
    %c0_26 = arith.constant 0 : index
    %27 = vector.load %arg11[%c0_25, %c0_26] : memref<1x128xf32, #tpu.memory_space<vmem>>, vector<1x128xf32>
    %28 = vector.broadcast %27 : vector<1x128xf32> to vector<16x128xf32>
    %29 = arith.addf %26, %28 : vector<16x128xf32>
    %c0_27 = arith.constant 0 : index
    %c0_28 = arith.constant 0 : index
    %30 = vector.load %arg12[%c0_27, %c0_28] : memref<16x128xf32, #tpu.memory_space<vmem>>, vector<16x128xf32>
    tpu.vector_store %arg12[%c0_27, %c0_28], %29 {strides = array<i32>} : memref<16x128xf32, #tpu.memory_space<vmem>>, vector<16x128xf32>,
    return
  }
  func.func @transform_0(%arg0: i32) -> (i32, i32) {
    %c0_i32 = arith.constant 0 : i32
    %c0_i32_0 = arith.constant 0 : i32
    return %arg0, %c0_i32 : i32, i32
  }
  func.func @transform_1(%arg0: i32) -> (i32, i32) {
    %c0_i32 = arith.constant 0 : i32
    %c0_i32_0 = arith.constant 0 : i32
    return %arg0, %c0_i32 : i32, i32
  }
  func.func @transform_2(%arg0: i32) -> (i32, i32) {
    %c0_i32 = arith.constant 0 : i32
    %c0_i32_0 = arith.constant 0 : i32
    return %arg0, %c0_i32 : i32, i32
  }
  func.func @transform_3(%arg0: i32) -> (i32, i32) {
    %c0_i32 = arith.constant 0 : i32
    %c0_i32_0 = arith.constant 0 : i32
    %c0_i32_1 = arith.constant 0 : i32
    return %c0_i32, %c0_i32_0 : i32, i32
  }
  func.func @transform_4(%arg0: i32) -> (i32, i32) {
    %c0_i32 = arith.constant 0 : i32
    %c0_i32_0 = arith.constant 0 : i32
    %c0_i32_1 = arith.constant 0 : i32
    return %c0_i32, %c0_i32_0 : i32, i32
  }
  func.func @transform_5(%arg0: i32) -> (i32, i32) {
    %c0_i32 = arith.constant 0 : i32
    %c0_i32_0 = arith.constant 0 : i32
    %c0_i32_1 = arith.constant 0 : i32
    return %c0_i32, %c0_i32_0 : i32, i32
  }
  func.func @transform_6(%arg0: i32) -> (i32, i32) {
    %c0_i32 = arith.constant 0 : i32
    %c0_i32_0 = arith.constant 0 : i32
    %c0_i32_1 = arith.constant 0 : i32
    return %c0_i32, %c0_i32_0 : i32, i32
  }
  func.func @transform_7(%arg0: i32) -> (i32, i32) {
    %c0_i32 = arith.constant 0 : i32
    %c0_i32_0 = arith.constant 0 : i32
    %c0_i32_1 = arith.constant 0 : i32
    return %c0_i32, %c0_i32_0 : i32, i32
  }
  func.func @transform_8(%arg0: i32) -> (i32, i32) {
    %c0_i32 = arith.constant 0 : i32
    %c0_i32_0 = arith.constant 0 : i32
    %c0_i32_1 = arith.constant 0 : i32
    return %c0_i32, %c0_i32_0 : i32, i32
  }
  func.func @transform_9(%arg0: i32) -> (i32, i32) {
    %c0_i32 = arith.constant 0 : i32
    %c0_i32_0 = arith.constant 0 : i32
    %c0_i32_1 = arith.constant 0 : i32
    return %c0_i32, %c0_i32_0 : i32, i32
  }
  func.func @transform_10(%arg0: i32) -> (i32, i32) {
    %c0_i32 = arith.constant 0 : i32
    %c0_i32_0 = arith.constant 0 : i32
    %c0_i32_1 = arith.constant 0 : i32
    return %c0_i32, %c0_i32_0 : i32, i32
  }
  func.func @transform_11(%arg0: i32) -> (i32, i32) {
    %c0_i32 = arith.constant 0 : i32
    %c0_i32_0 = arith.constant 0 : i32
    return %arg0, %c0_i32 : i32, i32
  }
}

</mosaic_0001>

<bundles_post_ra>
// kernel: dnn_forward.1
= control target key start
LH: loop header
LB: loop body
LE: loop exit
PB: predicated region body
PF: predicated region fallthrough
CT: control target
= control target key end

     0   :  { %v612_v0 = vmov 0.0   ;;  %vm613_vm0 = vmmov 0   ;;  %vm58_vm1 = vcmask 130048   ;;  %vm181_vm2 = vcmask 261120   ;;  %s788_s4 = inlined_call_operand.vmem [shape: bf16[16,128], index: 4, kind: input, shape index: {}]   ;;  %s789_s3 = inlined_call_operand.vmem [shape: bf16[16,128], index: 3, kind: input, shape index: {}]   ;;  %s790_s1 = inlined_call_operand.vmem [shape: bf16[16,16], index: 1, kind: input, shape index: {}]   ;;  %s791_s0 = inlined_call_operand.vmem [shape: bf16[16,16], index: 0, kind: input, shape index: {}]   ;;  %s792_s5 = inlined_call_operand.vmem [shape: bf16[32,128], index: 5, kind: input, shape index: {}]   ;;  %s793_s7 = inlined_call_operand.vmem [shape: bf16[128,128], index: 7, kind: input, shape index: {}]   ;;  %s794_s2 = inlined_call_operand.vmem [shape: bf16[16,32], index: 2, kind: input, shape index: {}]   ;;  %s795_s9 = inlined_call_operand.vmem [shape: bf16[128,128], index: 9, kind: input, shape index: {}]   ;;  %s796_s6 = inlined_call_operand.vmem [shape: f32[1,128], index: 6, kind: input, shape index: {}]   ;;  %s797_s8 = inlined_call_operand.vmem [shape: f32[1,128], index: 8, kind: input, shape index: {}]   ;;  %s798_s10 = inlined_call_operand.vmem [shape: f32[1,128], index: 10, kind: input, shape index: {}]   ;;  %s799_s11 = inlined_call_operand.vmem [shape: f32[16,128], index: 11, kind: output, shape index: {}]  }
   0x1   :  { %527 = vmatprep.subr.bf16.mxu0 %v612_v0  ;;  %533 = vmatprep.subr.bf16.mxu1 %v612_v0  ;;  %v589_v1 = vld [vmem:[%s788_s4] sm:$0xff]   ;;  %v593_v5 = vld [vmem:[%s792_s5 + $0x8] sm:$0xff]   ;;  %v596_v7 = vld [vmem:[%s793_s7 + $0x38] sm:$0xff]  }
   0x2   :  { %v590_v2 = vld [vmem:[%s789_s3] sm:$0xff]   ;;  %529 = vmatprep.mubr.msk.bf16.mxu0 %vm613_vm0, %v612_v0  ;;  %535 = vmatprep.mubr.msk.bf16.mxu1 %vm613_vm0, %v612_v0  ;;  %v597_v9 = vld [vmem:[%s793_s7 + $0x30] sm:$0xff]   ;;  %v598_v10 = vld [vmem:[%s793_s7 + $0x28] sm:$0xff]  }
   0x3   :  { %528 = vmatpush3.bf16.msra.mxu0 %v589_v1  ;;  %v591_v3 = vld [vmem:[%s790_s1] sm:$0xff]   ;;  %534 = vmatpush3.bf16.msra.mxu1 %v590_v2  ;;  %v600_v12 = vld [vmem:[%s793_s7 + $0x18] sm:$0xff]   ;;  %v601_v13 = vld [vmem:[%s793_s7 + $0x10] sm:$0xff]  }
   0x4   :  { %v592_v4 = vld [vmem:[%s791_s0] sm:$0xff]   ;;  %539 = vmatprep.subr.bf16.mxu0 %v612_v0  ;;  %547 = vmatprep.subr.bf16.mxu1 %v612_v0  ;;  %v602_v14 = vld [vmem:[%s793_s7 + $0x8] sm:$0xff]   ;;  %v604_v16 = vld [vmem:[%s795_s9 + $0x38] sm:$0xff]  }
   0x5   :  { %v594_v6 = vld [vmem:[%s792_s5] sm:$0xff]   ;;  %v605_v17 = vld [vmem:[%s795_s9 + $0x30] sm:$0xff]   ;;  %v606_v18 = vld [vmem:[%s795_s9 + $0x28] sm:$0xff]  }
   0x6   :  { %530 = vmatmul.mubr.msk.bf16.vlgmr.msra.gmra.mxu0 %vm58_vm1, %v591_v3  ;;  %536 = vmatmul.mubr.msk.bf16.vlgmr.msra.gmra.mxu1 %vm58_vm1, %v592_v4  ;;  %v595_v8 = vld [vmem:[%s794_s2] sm:$0xff]   ;;  %v608_v20 = vld [vmem:[%s795_s9 + $0x18] sm:$0xff]   ;;  %v609_v43 = vld [vmem:[%s795_s9 + $0x10] sm:$0xff]  }
   0x7   :  { %540 = vmatpush3.bf16.msra.mxu0 %v593_v5  ;;  %543 = vmatprep.mubr.msk.bf16.mxu0 %vm613_vm0, %v612_v0  ;;  %v599_v11 = vld [vmem:[%s793_s7 + $0x20] sm:$0xff]   ;;  %v610_v44 = vld [vmem:[%s795_s9 + $0x8] sm:$0xff]  }
   0x8   :  { %541 = vmatprep.subr.bf16.mxu0 %v612_v0  ;;  %563 = vmatprep.mubr.msk.bf16.mxu1 %vm613_vm0, %v612_v0  ;;  %v603_v15 = vld [vmem:[%s793_s7] sm:$0xff]  }
   0x9   :  { %548 = vmatpush3.bf16.msra.mxu1 %v596_v7  ;;  %v607_v19 = vld [vmem:[%s795_s9 + $0x20] sm:$0xff]  }
   0xa   :  { %549 = vmatprep.subr.bf16.mxu1 %v612_v0  ;;  %v483_v32 = vld [vmem:[%s796_s6] ss:$0 sm:$0xff] }
   0xb   :  { %542 = vmatpush3.bf16.msra.mxu0 %v594_v6  ;;  %v611_v45 = vld [vmem:[%s795_s9] sm:$0xff]  }
   0xc   :  { %567 = vmatprep.subr.bf16.mxu0 %v612_v0  ;;  %v484_v46 = vld [vmem:[%s797_s8] ss:$0 sm:$0xff] }
   0xd   :  { %550 = vmatpush3.bf16.msra.mxu1 %v597_v9  ;;  %v493_v56 = vld [vmem:[%s798_s10] ss:$0 sm:$0xff] }
   0xe   :  { %544 = vmatmul.mubr.msk.bf16.vlgmr.msra.gmra.mxu0 %vm181_vm2, %v595_v8  ;;  %551 = vmatprep.subr.bf16.mxu1 %v612_v0 }
   0xf   :  { %583 = vmatprep.mubr.msk.bf16.mxu0 %vm613_vm0, %v612_v0  ;;  %568 = vmatpush3.bf16.msra.mxu0 %v604_v16 }
  0x10   :  { %569 = vmatprep.subr.bf16.mxu0 %v612_v0 }
  0x11   :  { %552 = vmatpush3.bf16.msra.mxu1 %v598_v10 }
  0x12   :  { %553 = vmatprep.subr.bf16.mxu1 %v612_v0 }
  0x13   :  { %570 = vmatpush3.bf16.msra.mxu0 %v605_v17 }
  0x14   :  { %571 = vmatprep.subr.bf16.mxu0 %v612_v0 }
  0x15   :  { %554 = vmatpush3.bf16.msra.mxu1 %v599_v11 }
  0x16   :  { %555 = vmatprep.subr.bf16.mxu1 %v612_v0 }
  0x17   :  { %572 = vmatpush3.bf16.msra.mxu0 %v606_v18 }
  0x18   :  { %573 = vmatprep.subr.bf16.mxu0 %v612_v0 }
  0x19   :  { %556 = vmatpush3.bf16.msra.mxu1 %v600_v12 }
  0x1a   :  { %557 = vmatprep.subr.bf16.mxu1 %v612_v0 }
  0x1b   :  { %574 = vmatpush3.bf16.msra.mxu0 %v607_v19 }
  0x1c   :  { %575 = vmatprep.subr.bf16.mxu0 %v612_v0 }
  0x1d   :  { %558 = vmatpush3.bf16.msra.mxu1 %v601_v13 }
  0x1e   :  { %559 = vmatprep.subr.bf16.mxu1 %v612_v0 }
  0x1f   :  { %576 = vmatpush3.bf16.msra.mxu0 %v608_v20 }
  0x20   :  { %577 = vmatprep.subr.bf16.mxu0 %v612_v0 }
  0x21   :  { %560 = vmatpush3.bf16.msra.mxu1 %v602_v14 }
  0x22   :  { %561 = vmatprep.subr.bf16.mxu1 %v612_v0 }
  0x23   :  { %578 = vmatpush3.bf16.msra.mxu0 %v609_v43 }
  0x24   :  { %579 = vmatprep.subr.bf16.mxu0 %v612_v0 }
  0x25   :  { %562 = vmatpush3.bf16.msra.mxu1 %v603_v15 }
  0x27   :  { %580 = vmatpush3.bf16.msra.mxu0 %v610_v44 }
  0x28   :  { %581 = vmatprep.subr.bf16.mxu0 %v612_v0 }
  0x2b   :  { %582 = vmatpush3.bf16.msra.mxu0 %v611_v45 }
  0xc6   :  { %v96_v21 = vpop.f32.mrf.mxu0  ;;  %v151_v22 = vpop.f32.mrf.mxu1 }
  0xc7   :  { %v152_v28 = vadd.f32 %v151_v22, %v96_v21 }
  0xc8   :  { %v531_v23 = vpop.f32.mrf.mxu0  ;;  %v537_v24 = vpop.f32.mrf.mxu1 }
  0xca   :  { %v99_v25 = vpop.f32.mrf.mxu0  ;;  %v154_v26 = vpop.f32.mrf.mxu1 }
  0xcb   :  { %v155_v34 = vadd.f32 %v154_v26, %v99_v25 }
  0xcc   :  { %v532_v27 = vpop.f32.mrf.mxu0  ;;  %v538_v29 = vpop.f32.mrf.mxu1 }
  0xce   :  { %v219_v30 = vpop.f32.mrf.mxu0 }
  0xcf   :  { %v226_v31 = vadd.f32 %v219_v30, %v152_v28 }
  0xd0   :  { %v545_v33 = vpop.f32.mrf.mxu0 }
  0xd1   :  { %v235_v36 = vadd.f32 %v483_v32, %v226_v31 }
  0xd2   :  { %v222_v35 = vpop.f32.mrf.mxu0 }
  0xd3   :  { %v227_v37 = vadd.f32 %v222_v35, %v155_v34  ;;  %v237_v40 = vmax.f32 %v235_v36, 0.0 }
  0xd4   :  { %v546_v38 = vpop.f32.mrf.mxu0 }
  0xd5   :  { %v236_v39 = vadd.f32 %v483_v32, %v227_v37 }
  0xd7   :  { %v238_v41 = vmax.f32 %v236_v39, 0.0 }
  0xd9   :  { %v239_v42 = vpack.c.bf16 %v238_v41, %v237_v40 }
  0xdb   :  { %564 = vmatmul.mubr.bf16.vlgmr.msra.gmra.mxu1 %v239_v42 }
 0x19b   :  { %v345_v47 = vpop.f32.mrf.mxu1 }
 0x19c   :  { %v346_v49 = vadd.f32 %v484_v46, %v345_v47 }
 0x19d   :  { %v565_v48 = vpop.f32.mrf.mxu1 }
 0x19e   :  { %v352_v53 = vmax.f32 %v346_v49, 0.0 }
 0x19f   :  { %v348_v50 = vpop.f32.mrf.mxu1 }
 0x1a0   :  { %v349_v51 = vadd.f32 %v484_v46, %v348_v50 }
 0x1a1   :  { %v566_v52 = vpop.f32.mrf.mxu1 }
 0x1a2   :  { %v353_v54 = vmax.f32 %v349_v51, 0.0 }
 0x1a4   :  { %v354_v55 = vpack.c.bf16 %v353_v54, %v352_v53 }
 0x1a6   :  { %584 = vmatmul.mubr.bf16.vlgmr.msra.gmra.mxu0 %v354_v55 }
 0x266   :  { %v460_v57 = vpop.f32.mrf.mxu0 }
 0x267   :  { %v461_v58 = vadd.f32 %v493_v56, %v460_v57 }
 0x268   :  { %v585_v59 = vpop.f32.mrf.mxu0 }
 0x269   :  { %467 = vst [vmem:[%s799_s11] sm:$0xff] %v461_v58 }
 0x26a   :  { %v463_v60 = vpop.f32.mrf.mxu0 }
 0x26b   :  { %v464_v61 = vadd.f32 %v493_v56, %v463_v60 }
 0x26c   :  { %v586_v62 = vpop.f32.mrf.mxu0 }
 0x26d   :  { %468 = vst [vmem:[%s799_s11 + $0x8] sm:$0xff] %v464_v61 }

</bundles_post_ra>
